<compile_context>
chip_gen: v7x
topology: tpu7x:2x2x1
jax: 0.10.0
libtpu: 0.0.40
codegen_flags: <defaults>
</compile_context>

<pallas_src>
import math

import jax
import jax.numpy as jnp
from jax.experimental import pallas as pl
from jax.experimental.pallas import tpu as pltpu


# ------------------------------ Pallas kernels ------------------------------

def input_projection_kernel(x_ref, w_ref, b_ref, z_ref):
    """Z = x_rows @ [W_ih_f | W_ih_b] + [b_f | b_b] (bf16 operands, f32 acc).

    One lane-dense (tm, 8H) bf16 store: fwd gates in cols [:4H], bwd gates in
    cols [4H:], gate order (i, f, o, g) within each half.
    """
    z = jnp.dot(x_ref[...], w_ref[...], preferred_element_type=jnp.float32)
    z_ref[...] = (z + b_ref[...]).astype(z_ref.dtype)


def make_bilstm_recurrence_kernel(H, TT):
    """Recurrence kernel: TT timesteps of both directions per grid step."""
    H3, H4 = 3 * H, 4 * H

    def kernel(zf_ref, zb_ref, whh_ref, out_ref, hf_ref, cf_ref, hb_ref, cb_ref):
        tb = pl.program_id(1)
        n_tb = pl.num_programs(1)

        @pl.when(tb == 0)
        def _init():
            hf_ref[...] = jnp.zeros_like(hf_ref)
            cf_ref[...] = jnp.zeros_like(cf_ref)
            hb_ref[...] = jnp.zeros_like(hb_ref)
            cb_ref[...] = jnp.zeros_like(cb_ref)

        hf, cf = hf_ref[...], cf_ref[...]
        hb, cb = hb_ref[...], cb_ref[...]
        whh = whh_ref[...]                      # (2H, 8H) bf16, block-diagonal

        def gates(z, c):
            # z cols: [i | f | o] sigmoid slab, then [g] tanh slab.
            s = jax.nn.sigmoid(z[:, :H3])
            g = jnp.tanh(z[:, H3:])
            c_new = s[:, H:2 * H] * c + s[:, :H] * g
            h_new = s[:, 2 * H:H3] * jnp.tanh(c_new)
            return h_new, c_new

        # TT is a small static int -> fully unrolled inner time loop (static
        # indices, LLO can interleave the two independent direction chains).
        for tt in range(TT):
            h2 = jnp.concatenate([hf, hb], axis=1).astype(whh.dtype)  # (TB, 2H)
            z8 = jnp.dot(h2, whh, preferred_element_type=jnp.float32)  # (TB, 8H)
            zf = z8[:, :H4] + zf_ref[tt].astype(jnp.float32)
            zb = z8[:, H4:] + zb_ref[TT - 1 - tt].astype(jnp.float32)
            hf, cf = gates(zf, cf)
            hb, cb = gates(zb, cb)

        hf_ref[...] = hf
        cf_ref[...] = cf
        hb_ref[...] = hb
        cb_ref[...] = cb

        @pl.when(tb == n_tb - 1)
        def _finalize():
            # torch: hidden.transpose(1, 0).sum(dim=1) == h_fw_final + h_bw_final
            out_ref[...] = (hf + hb).astype(out_ref.dtype)

    return kernel


# ------------------------------ wrapper / glue -------------------------------

def _reorder_gates_ifog(w):
    """PyTorch gate order (i, f, g, o) -> (i, f, o, g) along the leading axis."""
    H = w.shape[0] // 4
    return jnp.concatenate([w[:2 * H], w[3 * H:], w[2 * H:3 * H]], axis=0)


def _vmem_budget_bytes():
    """~75% of the actual chip's VMEM (falls back to the v7x-safe 64 MiB)."""
    cap = 64 << 20
    try:
        info = pltpu.get_tpu_info()
        cap = int(getattr(info, "vmem_capacity_bytes", cap))
    except Exception:
        pass
    return int(0.75 * cap)


def _row_tile(M, row_bytes, budget_bytes):
    """Largest multiple-of-16 divisor of M (bf16 sublane packing) whose rows fit
    the budget, capped at 2048; falls back to the full M (always legal)."""
    cap = min(2048, max(16, budget_bytes // max(row_bytes, 1)))
    best = None
    d = 16
    while d <= min(M, cap):
        if M % d == 0:
            best = d
        d += 16
    return best if best is not None else M


def _batch_tile(B):
    """Batch tile for the recurrence: divides B, multiple of 16 unless it is
    the whole batch; for larger B prefer >= 2 tiles so megacore gets work."""
    if B <= 16:
        return B
    best = B
    d = 16
    cap = min(B // 2, 256)
    while d <= cap:
        if B % d == 0:
            best = d
        d += 16
    return best


def _time_tile(T, max_tt=8):
    """Largest divisor of T that is <= max_tt (timesteps per grid step)."""
    best = 1
    for d in range(1, min(T, max_tt) + 1):
        if T % d == 0:
            best = d
    return best


def lstm_mean_forward(x, params):
    """BiLSTM forward returning h_fw_final + h_bw_final, shape (B, H)."""
    B, T, I = x.shape
    H = params["w_hh_f"].shape[1]
    H4, H8 = 4 * H, 8 * H
    M = T * B

    # ---- weight prep: reorder gates, pre-transpose, fold biases, cast bf16 --
    wih_f = _reorder_gates_ifog(params["w_ih_f"]).T            # (I, 4H)
    wih_b = _reorder_gates_ifog(params["w_ih_b"]).T            # (I, 4H)
    whh_f = _reorder_gates_ifog(params["w_hh_f"]).T            # (H, 4H)
    whh_b = _reorder_gates_ifog(params["w_hh_b"]).T            # (H, 4H)
    b_f = _reorder_gates_ifog(params["b_ih_f"] + params["b_hh_f"])
    b_b = _reorder_gates_ifog(params["b_ih_b"] + params["b_hh_b"])

    w_x = jnp.concatenate([wih_f, wih_b], axis=1).astype(jnp.bfloat16)   # (I, 8H)
    b_x = jnp.concatenate([b_f, b_b]).reshape(1, H8).astype(jnp.float32)

    # Fused block-diagonal recurrent weight: [h_f | h_b] @ whh -> all 8H gates.
    whh = jnp.zeros((2 * H, H8), jnp.float32)
    whh = whh.at[:H, :H4].set(whh_f).at[H:, H4:].set(whh_b)
    whh = whh.astype(jnp.bfloat16)                                       # (2H, 8H)

    # Time-major rows for the projection / per-timestep streaming.
    x_rows = jnp.transpose(x, (1, 0, 2)).reshape(M, I).astype(jnp.bfloat16)

    budget = _vmem_budget_bytes()

    # ---- Kernel 1: hoisted input projection (one big MXU matmul) -----------
    row_bytes = 2 * (I * 2) + 2 * (H8 * 2)          # dbl-buffered bf16 in + out
    tm = _row_tile(M, row_bytes, budget // 2)
    proj_need = (2 * tm * I * 2        # x blocks, double-buffered, bf16
                 + I * H8 * 2          # weight, single-buffered, bf16
                 + 2 * H8 * 4          # bias
                 + 2 * tm * H8 * 2)    # output blocks, double-buffered, bf16
    proj_limit = int(min(budget, max(8 << 20, 2 * proj_need)))

    z = pl.pallas_call(
        input_projection_kernel,
        out_shape=jax.ShapeDtypeStruct((M, H8), jnp.bfloat16),
        grid_spec=pltpu.PrefetchScalarGridSpec(
            num_scalar_prefetch=0,
            grid=(M // tm,),
            in_specs=[
                pl.BlockSpec((tm, I), lambda m: (m, 0)),
                pl.BlockSpec((I, H8), lambda m: (0, 0),
                             pipeline_mode=pl.Buffered(1)),
                pl.BlockSpec((1, H8), lambda m: (0, 0),
                             pipeline_mode=pl.Buffered(1)),
            ],
            out_specs=pl.BlockSpec((tm, H8), lambda m: (m, 0)),
        ),
        compiler_params=pltpu.CompilerParams(
            dimension_semantics=("parallel",),
            vmem_limit_bytes=proj_limit),
        cost_estimate=pl.CostEstimate(
            flops=int(2 * M * I * H8),
            transcendentals=0,
            bytes_accessed=int(M * I * 2 + I * H8 * 2 + H8 * 4 + M * H8 * 2)),
    )(x_rows, w_x, b_x)

    zx = z.reshape(T, B, H8)       # time-major fused gate pre-activations

    # ---- Kernel 2: recurrence, TT precomputed timesteps per grid step ------
    TT = _time_tile(T)
    TB = _batch_tile(B)
    nT = T // TT

    if H4 % 128 == 0:
        # Lane-dense single array; fwd/bwd halves selected via last-dim block
        # index (0 / 1) in the BlockSpecs, no wrapper-side split needed.
        zf_arr, zb_arr = zx, zx
        f_sel, b_sel = 0, 1
    else:
        # Fallback when 4H is not a multiple of 128: split in the wrapper so
        # each streamed block covers a full last dim (always a legal block).
        zf_arr, zb_arr = zx[:, :, :H4], zx[:, :, H4:]
        f_sel, b_sel = 0, 0

    rec_need = (2 * 2 * TT * TB * H4 * 2   # two zx streams, dbl-buffered, bf16
                + 2 * H * H8 * 2           # fused whh, single-buffered, bf16
                + 2 * TB * H * 4           # output block
                + 4 * TB * H * 4)          # h/c scratch, both directions
    rec_limit = int(min(budget, max(8 << 20, 2 * rec_need)))

    kernel = make_bilstm_recurrence_kernel(H, TT)
    out = pl.pallas_call(
        kernel,
        out_shape=jax.ShapeDtypeStruct((B, H), jnp.float32),
        grid_spec=pltpu.PrefetchScalarGridSpec(
            num_scalar_prefetch=0,
            grid=(B // TB, nT),
            in_specs=[
                pl.BlockSpec((TT, TB, H4), lambda b, t: (t, b, f_sel)),
                pl.BlockSpec((TT, TB, H4), lambda b, t: (nT - 1 - t, b, b_sel)),
                pl.BlockSpec((2 * H, H8), lambda b, t: (0, 0),
                             pipeline_mode=pl.Buffered(1)),
            ],
            out_specs=pl.BlockSpec((TB, H), lambda b, t: (b, 0)),
            scratch_shapes=[pltpu.VMEM((TB, H), jnp.float32)] * 4,
        ),
        compiler_params=pltpu.CompilerParams(
            dimension_semantics=("parallel", "arbitrary"),
            vmem_limit_bytes=rec_limit),
        cost_estimate=pl.CostEstimate(
            flops=int(2 * T * B * (2 * H) * H8),
            transcendentals=int(10 * T * B * H),
            bytes_accessed=int(2 * T * B * H4 * 2 + 2 * H * H8 * 2 + B * H * 4)),
    )(zf_arr, zb_arr, whh)
    return out


# ------------------------------ reference & init -----------------------------

def lstm_mean_reference(x, params):
    """Pure-JAX f32 reference mirroring PyTorch nn.LSTM semantics."""
    B, T, I = x.shape
    H = params["w_hh_f"].shape[1]

    def run_dir(xs, w_ih, w_hh, b_ih, b_hh):
        h = jnp.zeros((B, H), jnp.float32)
        c = jnp.zeros((B, H), jnp.float32)
        for t in range(xs.shape[1]):
            z = xs[:, t, :] @ w_ih.T + h @ w_hh.T + b_ih + b_hh
            i = jax.nn.sigmoid(z[:, :H])
            f = jax.nn.sigmoid(z[:, H:2 * H])
            g = jnp.tanh(z[:, 2 * H:3 * H])
            o = jax.nn.sigmoid(z[:, 3 * H:])
            c = f * c + i * g
            h = o * jnp.tanh(c)
        return h

    h_fw = run_dir(x, params["w_ih_f"], params["w_hh_f"],
                   params["b_ih_f"], params["b_hh_f"])
    h_bw = run_dir(x[:, ::-1, :], params["w_ih_b"], params["w_hh_b"],
                   params["b_ih_b"], params["b_hh_b"])
    return h_fw + h_bw


def init_params(key, input_size, hidden_size):
    """Deterministic init matching PyTorch LSTM param shapes (uniform +/-1/sqrt(H))."""
    k = 1.0 / math.sqrt(hidden_size)
    keys = jax.random.split(key, 8)
    u = lambda kk, shape: jax.random.uniform(kk, shape, jnp.float32, -k, k)
    return {
        "w_ih_f": u(keys[0], (4 * hidden_size, input_size)),
        "w_hh_f": u(keys[1], (4 * hidden_size, hidden_size)),
        "b_ih_f": u(keys[2], (4 * hidden_size,)),
        "b_hh_f": u(keys[3], (4 * hidden_size,)),
        "w_ih_b": u(keys[4], (4 * hidden_size, input_size)),
        "w_hh_b": u(keys[5], (4 * hidden_size, hidden_size)),
        "b_ih_b": u(keys[6], (4 * hidden_size,)),
        "b_hh_b": u(keys[7], (4 * hidden_size,)),
    }


if __name__ == "__main__":
    B, T, I, H = 2, 8, 16, 32
    key = jax.random.PRNGKey(0)
    kx, kp = jax.random.split(key)
    x = jax.random.normal(kx, (B, T, I), jnp.float32)
    params = init_params(kp, I, H)

    out = lstm_mean_forward(x, params)
    out = jax.block_until_ready(out)

    ref = lstm_mean_reference(x, params)
    assert out.shape == (B, H)
    # bf16 MXU operands (per perf review) -> relaxed tolerance vs the f32 reference.
    assert jnp.allclose(out, ref, atol=5e-2, rtol=5e-2), "mismatch vs reference"

    print("KERNEL_OK")
</pallas_src>

<mosaic_0001>
module attributes {stable_mosaic.version = 11 : i64} {
  func.func @input_projection_kernel(%arg0: i32, %arg1: memref<16x16xbf16, #tpu.memory_space<vmem>>, %arg2: memref<16x256xbf16, #tpu.memory_space<vmem>>, %arg3: memref<1x256xf32, #tpu.memory_space<vmem>>, %arg4: memref<16x256xbf16, #tpu.memory_space<vmem>>) attributes {dimension_semantics = [#tpu.dimension_semantics<parallel>], iteration_bounds = array<i64: 1>, scalar_prefetch = 0 : i64, scratch_operands = 0 : i64, tpu.core_type = #tpu.core_type<tc>, window_params = [{transform_indices = @transform_0, window_bounds = array<i64: 16, 16>}, {pipeline_mode = #tpu.pipeline_mode<synchronous>, transform_indices = @transform_1, window_bounds = array<i64: 16, 256>}, {pipeline_mode = #tpu.pipeline_mode<synchronous>, transform_indices = @transform_2, window_bounds = array<i64: 1, 256>}, {transform_indices = @transform_3, window_bounds = array<i64: 16, 256>}]} {
    %c0 = arith.constant 0 : index
    %c0_0 = arith.constant 0 : index
    %0 = vector.load %arg1[%c0, %c0_0] : memref<16x16xbf16, #tpu.memory_space<vmem>>, vector<16x16xbf16>
    %c0_1 = arith.constant 0 : index
    %c0_2 = arith.constant 0 : index
    %1 = vector.load %arg2[%c0_1, %c0_2] : memref<16x256xbf16, #tpu.memory_space<vmem>>, vector<16x256xbf16>
    %cst = arith.constant dense<0.000000e+00> : vector<16x256xf32>
    %2 = tpu.matmul %0, %1, %cst {dimension_numbers = #tpu.dot_dimension_numbers<[1], [0], [0], [1], [0, 0, 1, 1], [], []>} : vector<16x16xbf16>, vector<16x256xbf16>, vector<16x256xf32> -> vector<16x256xf32>
    %c0_3 = arith.constant 0 : index
    %c0_4 = arith.constant 0 : index
    %3 = vector.load %arg3[%c0_3, %c0_4] : memref<1x256xf32, #tpu.memory_space<vmem>>, vector<1x256xf32>
    %4 = vector.broadcast %3 : vector<1x256xf32> to vector<16x256xf32>
    %5 = arith.addf %2, %4 : vector<16x256xf32>
    %6 = arith.truncf %5 : vector<16x256xf32> to vector<16x256xbf16>
    %c0_5 = arith.constant 0 : index
    %c0_6 = arith.constant 0 : index
    %7 = vector.load %arg4[%c0_5, %c0_6] : memref<16x256xbf16, #tpu.memory_space<vmem>>, vector<16x256xbf16>
    tpu.vector_store %arg4[%c0_5, %c0_6], %6 {strides = array<i32>} : memref<16x256xbf16, #tpu.memory_space<vmem>>, vector<16x256xbf16>,
    return
  }
  func.func @transform_0(%arg0: i32) -> (i32, i32) {
    %c0_i32 = arith.constant 0 : i32
    %c0_i32_0 = arith.constant 0 : i32
    return %arg0, %c0_i32 : i32, i32
  }
  func.func @transform_1(%arg0: i32) -> (i32, i32) {
    %c0_i32 = arith.constant 0 : i32
    %c0_i32_0 = arith.constant 0 : i32
    %c0_i32_1 = arith.constant 0 : i32
    return %c0_i32, %c0_i32_0 : i32, i32
  }
  func.func @transform_2(%arg0: i32) -> (i32, i32) {
    %c0_i32 = arith.constant 0 : i32
    %c0_i32_0 = arith.constant 0 : i32
    %c0_i32_1 = arith.constant 0 : i32
    return %c0_i32, %c0_i32_0 : i32, i32
  }
  func.func @transform_3(%arg0: i32) -> (i32, i32) {
    %c0_i32 = arith.constant 0 : i32
    %c0_i32_0 = arith.constant 0 : i32
    return %arg0, %c0_i32 : i32, i32
  }
}

</mosaic_0001>

<bundles_post_ra>
// kernel: tpu_custom_call.1
= control target key start
LH: loop header
LB: loop body
LE: loop exit
PB: predicated region body
PF: predicated region fallthrough
CT: control target
= control target key end

     0   :  { %8 = vsyncpa [#allocation3], 0  ;;  %s319_s0 = inlined_call_operand.hbm [shape: bf16[16,16], index: 0, kind: input, shape index: {}]   ;;  %s320_s1 = inlined_call_operand.hbm [shape: bf16[16,256], index: 1, kind: input, shape index: {}]   ;;  %s321_s2 = inlined_call_operand.vmem [shape: f32[1,256], index: 2, kind: input, shape index: {}]   ;;  %s322_s3 = inlined_call_operand.hbm [shape: bf16[16,256], index: 3, kind: output, shape index: {}]  }
   0x1   :  { %9 = vsyncpa [#allocation6], 0 }
   0x2   :  { %10 = vsyncpa [#allocation4], 0  ;;  %s246_s12 = smov [#allocation2]   ;;  %s174_s16 = scalar_lea.hbm %s319_s0, 128 }
   0x3   :  { %s16_s13 = sshll.u32 %s246_s12, 4  ;;  %p175_p0 = scmp.ne.s32.totalorder %s319_s0, %s174_s16  ;;  %s17_s13 = int_to_ptr.vmem [resolvable:$true] %s16_s13 }
   0x4   :  { %p178_p1 = scmp.lt.u32.totalorder %s174_s16, %s319_s0 }
   0x6   :  { %p180_p2 = pnand %p178_p1, %p175_p0 }
   0x8   :  { %183 = shalt.err (!%p180_p2)
}
   0x9   :  { %s184_s21 = scalar_lea.vmem %s17_s13, 128  ;;  %p189_p4 = scmp.lt.s32.totalorder %s17_s13, %s17_s13 }
   0xa   :  { %p185_p3 = scmp.ne.s32.totalorder %s17_s13, %s184_s21  ;;  %p190_p5 = scmp.lt.s32.totalorder %s184_s21, %s184_s21 }
   0xc   :  { %p191_p6 = por %p190_p5, %p189_p4 }
   0xe   :  { %p192_p7 = pnand %p191_p6, %p185_p3 }
  0x10   :  { %195 = shalt.err (!%p192_p7)
}
  0x11   :  { %s247_s22 = smov 64   ;;  %s248_s23 = smov 4  }
  0x12   :  { %22 = dma.hbm_to_vmem [thread:$0]  %s319_s0, 128, %s17_s13, [#allocation3], %s247_s22, %s247_s22, %s248_s23  }
  0x13   :  { %s249_s26 = smov [#allocation5]   ;;  %s196_s30 = scalar_lea.hbm %s320_s1, 256 }
  0x14   :  { %s28_s27 = sshll.u32 %s249_s26, 4  ;;  %p197_p8 = scmp.ne.s32.totalorder %s320_s1, %s196_s30  ;;  %s29_s27 = int_to_ptr.vmem [resolvable:$true] %s28_s27 }
  0x15   :  { %p200_p9 = scmp.lt.u32.totalorder %s196_s30, %s320_s1 }
  0x17   :  { %p202_p10 = pnand %p200_p9, %p197_p8 }
  0x19   :  { %205 = shalt.err (!%p202_p10)
}
  0x1a   :  { %s206_s8 = scalar_lea.vmem %s29_s27, 256  ;;  %p211_p12 = scmp.lt.s32.totalorder %s29_s27, %s29_s27 }
  0x1b   :  { %p207_p11 = scmp.ne.s32.totalorder %s29_s27, %s206_s8  ;;  %p212_p13 = scmp.lt.s32.totalorder %s206_s8, %s206_s8 }
  0x1d   :  { %p213_p0 = por %p212_p13, %p211_p12 }
  0x1f   :  { %p214_p1 = pnand %p213_p0, %p207_p11 }
  0x21   :  { %217 = shalt.err (!%p214_p1)
}
  0x22   :  { %s250_s0 = smov 128   ;;  %s251_s9 = smov 8  }
  0x23   :  { %34 = dma.hbm_to_vmem [thread:$0]  %s320_s1, 256, %s29_s27, [#allocation6], %s250_s0, %s250_s0, %s251_s9  }
  0x24   :  { %240 = dma.done.wait [#allocation3], 128  }
  0x25   :  { %241 = vsyncadd [#allocation3], 4294967168 }
  0x26   :  { %242 = dma.done.wait [#allocation6], 256  }
  0x27   :  { %243 = vsyncadd [#allocation6], 4294967040  ;;  %v252_v0 = vmov 0   ;;  %v170_v1 = vld [vmem:[#allocation5 + $0x4] ss:$8 sps:$4 sm:$0xff]   ;;  %v173_v3 = vld [vmem:[#allocation2] sm:$0xff]   ;;  %v50_v4 = vlaneseq }
  0x28   :  { %111 = vmatprep.mubr.bf16.mxu0 %v252_v0  ;;  %v172_v2 = vld [vmem:[#allocation5] ss:$8 sps:$4 sm:$0xff]   ;;  %79 = vmatprep.subr.bf16.mxu0 %v170_v1  ;;  %vm75_vm0 = vcmask 130048   ;;  %v48_v7 = vld [vmem:[%s321_s2] sm:$0x3]  ;;  %s253_s1 = smov [#allocation7]  }
  0x29   :  { %80 = vmatpush1.bf16.msra.mxu0 %v172_v2  ;;  %v51_v5 = vshrl.u32 %v50_v4, 7  ;;  %s141_s14 = sshll.u32 %s253_s1, 4  ;;  %s142_s14 = int_to_ptr.vmem [resolvable:$true] %s141_s14 }
  0x2a   :  { %s218_s15 = scalar_lea.vmem %s142_s14, 256  ;;  %p223_p3 = scmp.lt.s32.totalorder %s142_s14, %s142_s14 }
  0x2b   :  { %v52_v6 = vsub.s32 0, %v51_v5  ;;  %v56_v8 = vsub.s32 1, %v51_v5  ;;  %p219_p2 = scmp.ne.s32.totalorder %s142_s14, %s218_s15  ;;  %p224_p4 = scmp.lt.s32.totalorder %s218_s15, %s218_s15 }
  0x2c   :  { %157 = vmatmul.mubr.msk.bf16.vlgmr.msra.gmra.mrb[0].mxu0 %vm75_vm0, %v173_v3 }
  0x2d   :  { %v53_v9 = vrot.slane %v48_v7, %v52_v6  ;;  %v57_v10 = vrot.slane %v48_v7, %v56_v8  ;;  %p225_p5 = por %p224_p4, %p223_p3 }
  0x2f   :  { %p226_p6 = pnand %p225_p5, %p219_p2 }
  0xff   :  { %v113_v11 = vpop.f32.mrb[0].mxu0 }
 0x100   :  { %v114_v12 = vadd.f32 %v113_v11, %v53_v9  ;;  %v115_v13 = vpop.f32.mrb[1].mxu0 }
 0x101   :  { %v116_v14 = vadd.f32 %v115_v13, %v57_v10  ;;  %v117_v15 = vpop.f32.mrb[2].mxu0 }
 0x102   :  { %v118_v16 = vadd.f32 %v117_v15, %v53_v9  ;;  %v119_v17 = vpop.f32.mrb[3].mxu0 }
 0x103   :  { %v160_v18 = vpack.c.bf16 %v116_v14, %v114_v12  ;;  %v120_v19 = vadd.f32 %v119_v17, %v57_v10 }
 0x105   :  { %134 = vst [vmem:[#allocation7] sm:$0xff] %v160_v18  ;;  %v161_v20 = vpack.c.bf16 %v120_v19, %v118_v16 }
 0x107   :  { %135 = vst [vmem:[#allocation7 + $0x8] sm:$0xff] %v161_v20 }
 0x108   :  { %229 = shalt.err (!%p226_p6)
}
 0x109   :  { %s230_s17 = scalar_lea.hbm %s322_s3, 256 }
 0x10a   :  { %p231_p7 = scmp.ne.s32.totalorder %s322_s3, %s230_s17  ;;  %p234_p8 = scmp.lt.u32.totalorder %s230_s17, %s322_s3 }
 0x10c   :  { %p236_p9 = pnand %p234_p8, %p231_p7 }
 0x10e   :  { %239 = shalt.err (!%p236_p9)
}
 0x10f   :  { %147 = dma.vmem_to_hbm [thread:$0]  %s142_s14, 256, %s322_s3, [#allocation4], %s250_s0, %s250_s0, %s251_s9  }
 0x110   :  { %244 = dma.done.wait [#allocation4], 256  }
 0x111   :  { %245 = vsyncadd [#allocation4], 4294967040 }
 0x112   :  { %151 = vsyncpa [#allocation3], 1 }
 0x113   :  { %152 = vsyncpa [#allocation6], 1 }
 0x114   :  { %153 = vsyncpa [#allocation4], 1 }

</bundles_post_ra>
